<compile_context>
chip_gen: v7x
topology: tpu7x:2x2x1
jax: 0.10.0
libtpu: 0.0.40
codegen_flags: <defaults>
</compile_context>

<pallas_src>
import numpy as np

import jax
import jax.numpy as jnp
from jax.experimental import pallas as pl
from jax.experimental.pallas import tpu as pltpu


def _pick_tile(full, cap, align):
    """Largest divisor of `full` that is <= cap and a multiple of `align`.

    Falls back to `full` (a full-extent block is always a legal BlockSpec)."""
    if full <= cap:
        return full
    t = (cap // align) * align
    while t >= align:
        if full % t == 0:
            return t
        t -= align
    return full


def _sublane_align(dtype):
    return {4: 8, 2: 16, 1: 32}.get(jnp.dtype(dtype).itemsize, 8)


def _perm_matrix_width(r, tw, dtype):
    """P[j*tw + w, w*r + j] = 1  (lane / width interleave of r channel tiles)."""
    p = np.zeros((r * tw, tw * r), np.float32)
    w = np.arange(tw)
    for j in range(r):
        p[j * tw + w, w * r + j] = 1.0
    return jnp.asarray(p, dtype)


def _perm_matrix_full(r, W, dtype):
    """P[(i*r+j)*W + w, i*W*r + w*r + j] = 1  (full-row shuffle for small planes)."""
    rr = r * r
    p = np.zeros((rr * W, r * W * r), np.float32)
    w = np.arange(W)
    for i in range(r):
        for j in range(r):
            p[(i * r + j) * W + w, i * W * r + w * r + j] = 1.0
    return jnp.asarray(p, dtype)


def _pixel_shuffle_kernel(x_ref, p_ref, o_ref):
    # x_ref: (cb, nch, tH, tW)  channel block feeding the output lanes of this step
    # p_ref: (nch*tW, L)        0/1 lane-permutation matrix (constant block, VMEM-resident)
    # o_ref: (cb, tH, L)        lane-dense output slab
    cb, nch, tH, tW = x_ref.shape
    cdt = p_ref.dtype
    for c in range(cb):
        # xs[h, k*tW + w] = x[c, k, h, w]; concat at lane boundaries (cheap copy).
        xs = jnp.concatenate(
            [x_ref[c, k].astype(cdt) for k in range(nch)], axis=-1)
        out = jnp.dot(xs, p_ref[...], preferred_element_type=jnp.float32)
        o_ref[c] = out.astype(o_ref.dtype)


def up_sample(x, upscale_factor):
    """Pallas equivalent of Up_Sample(upscale_factor)(x) with x in NCHW."""
    N, C_in, H, W = x.shape
    r = int(upscale_factor)
    rr = r * r
    assert C_in % rr == 0, "channels must be divisible by upscale_factor**2"
    C_out = C_in // rr
    NC = N * C_out

    if r == 1:
        return x

    itemsize = jnp.dtype(x.dtype).itemsize
    sub_align = _sublane_align(x.dtype)

    if jnp.issubdtype(x.dtype, jnp.floating):
        cdtype = jnp.bfloat16 if x.dtype == jnp.bfloat16 else jnp.float32
    else:
        cdtype = jnp.float32  # TODO(synk): exact only for integer magnitudes < 2**24

    # Free (contiguous) reshapes: group the r*r input channels of each output channel,
    # and view the output as (NC, H, r*W*r) so each (h, i) sub-row is a contiguous slab.
    x_r = x.reshape(NC, rr, H, W)
    out_struct = jax.ShapeDtypeStruct((NC, H, r * W * r), x.dtype)

    # Lane tile: cap at 128 (MXU work per element scales with r*tW).
    tW = _pick_tile(W, 128, 128)
    lane_dense = (tW % 128 == 0) or (tW == W and (W * r) % 128 == 0)

    if lane_dense:
        # ---- main path: one lane-interleave matmul per step, strided-free output DMA ----
        tH_cap = max(sub_align, (128 * 512) // max(tW, 128))   # ~512 rows when tW == 128
        tH = _pick_tile(H, tH_cap, sub_align)
        p_mat = _perm_matrix_width(r, tW, cdtype)
        w_blocks = W // tW

        out = pl.pallas_call(
            _pixel_shuffle_kernel,
            out_shape=out_struct,
            grid_spec=pltpu.PrefetchScalarGridSpec(
                num_scalar_prefetch=0,
                grid=(NC, H // tH, r, w_blocks),
                in_specs=[
                    # the r input channels i*r .. i*r+r-1, one (tH, tW) spatial tile
                    pl.BlockSpec((1, r, tH, tW),
                                 lambda b, hi, i, wi: (b, i, hi, wi)),
                    # permutation matrix: constant block index -> fetched once
                    pl.BlockSpec((r * tW, tW * r),
                                 lambda b, hi, i, wi: (0, 0)),
                ],
                out_specs=pl.BlockSpec(
                    (1, tH, tW * r),
                    lambda b, hi, i, wi: (b, hi, i * w_blocks + wi)),
            ),
            compiler_params=pltpu.CompilerParams(
                dimension_semantics=("parallel", "parallel", "parallel", "parallel")),
        )(x_r, p_mat)
    else:
        # ---- small-plane fallback: full spatial extent, batch channels per step ----
        per_ch_bytes = rr * H * W * itemsize
        cb = max(1, min(NC, 16, (1 << 20) // max(per_ch_bytes, 1)))
        while NC % cb:
            cb -= 1
        p_mat = _perm_matrix_full(r, W, cdtype)

        out = pl.pallas_call(
            _pixel_shuffle_kernel,
            out_shape=out_struct,
            grid_spec=pltpu.PrefetchScalarGridSpec(
                num_scalar_prefetch=0,
                grid=(NC // cb,),
                in_specs=[
                    pl.BlockSpec((cb, rr, H, W), lambda b: (b, 0, 0, 0)),
                    pl.BlockSpec((rr * W, r * W * r), lambda b: (0, 0)),
                ],
                out_specs=pl.BlockSpec((cb, H, r * W * r), lambda b: (b, 0, 0)),
            ),
            compiler_params=pltpu.CompilerParams(
                dimension_semantics=("parallel",)),
        )(x_r, p_mat)

    # Free reshape back to NCHW.
    return out.reshape(N, C_out, H * r, W * r)


def _pixel_shuffle_reference(x, r):
    # Pure-JAX reference matching torch.nn.PixelShuffle semantics (NCHW).
    N, C_in, H, W = x.shape
    C = C_in // (r * r)
    y = x.reshape(N, C, r, r, H, W)
    y = jnp.transpose(y, (0, 1, 4, 2, 5, 3))
    return y.reshape(N, C, H * r, W * r)


if __name__ == "__main__":
    upscale_factor = 2

    # Small case consistent with the module (exercises the channel-batched fallback).
    x_small = jax.random.normal(jax.random.PRNGKey(0), (2, 8, 16, 16), dtype=jnp.float32)
    out_small = jax.block_until_ready(up_sample(x_small, upscale_factor))
    ref_small = _pixel_shuffle_reference(x_small, upscale_factor)
    assert out_small.shape == (2, 2, 32, 32)
    assert bool(jnp.allclose(out_small, ref_small, atol=0.0, rtol=0.0)), "small mismatch"

    # Larger, lane-dense case exercising the main path (single width-interleave matmul,
    # height interleave absorbed into the output BlockSpec / grid `i` axis).
    x_big = jax.random.normal(jax.random.PRNGKey(1), (1, 4, 256, 256), dtype=jnp.float32)
    out_big = jax.block_until_ready(up_sample(x_big, upscale_factor))
    ref_big = _pixel_shuffle_reference(x_big, upscale_factor)
    assert out_big.shape == (1, 1, 512, 512)
    assert bool(jnp.allclose(out_big, ref_big, atol=0.0, rtol=0.0)), "tiled mismatch"

    # bf16 case (dtype-aware sublane alignment; bf16 permutation is exact).
    x_bf16 = jax.random.normal(jax.random.PRNGKey(2), (1, 8, 128, 128)).astype(jnp.bfloat16)
    out_bf16 = jax.block_until_ready(up_sample(x_bf16, upscale_factor))
    ref_bf16 = _pixel_shuffle_reference(x_bf16, upscale_factor)
    assert out_bf16.shape == (1, 2, 256, 256)
    assert bool(jnp.allclose(out_bf16.astype(jnp.float32),
                             ref_bf16.astype(jnp.float32), atol=0.0, rtol=0.0)), "bf16 mismatch"

    print("KERNEL_OK")
</pallas_src>

<mosaic_0001>
module attributes {stable_mosaic.version = 11 : i64} {
  func.func @_pixel_shuffle_kernel(%arg0: i32, %arg1: memref<4x4x16x16xf32, #tpu.memory_space<vmem>>, %arg2: memref<64x64xf32, #tpu.memory_space<vmem>>, %arg3: memref<4x16x64xf32, #tpu.memory_space<vmem>>) attributes {dimension_semantics = [#tpu.dimension_semantics<parallel>], iteration_bounds = array<i64: 1>, scalar_prefetch = 0 : i64, scratch_operands = 0 : i64, tpu.core_type = #tpu.core_type<tc>, window_params = [{transform_indices = @transform_0, window_bounds = array<i64: 4, 4, 16, 16>}, {pipeline_mode = #tpu.pipeline_mode<synchronous>, transform_indices = @transform_1, window_bounds = array<i64: 64, 64>}, {transform_indices = @transform_2, window_bounds = array<i64: 4, 16, 64>}]} {
    %c0 = arith.constant 0 : index
    %c0_0 = arith.constant 0 : index
    %c0_1 = arith.constant 0 : index
    %c0_2 = arith.constant 0 : index
    %0 = vector.load %arg1[%c0, %c0_0, %c0_1, %c0_2] : memref<4x4x16x16xf32, #tpu.memory_space<vmem>>, vector<1x1x16x16xf32>
    %1 = vector.shape_cast %0 : vector<1x1x16x16xf32> to vector<16x16xf32>
    %c0_3 = arith.constant 0 : index
    %c1 = arith.constant 1 : index
    %c0_4 = arith.constant 0 : index
    %c0_5 = arith.constant 0 : index
    %2 = vector.load %arg1[%c0_3, %c1, %c0_4, %c0_5] : memref<4x4x16x16xf32, #tpu.memory_space<vmem>>, vector<1x1x16x16xf32>
    %3 = vector.shape_cast %2 : vector<1x1x16x16xf32> to vector<16x16xf32>
    %c0_6 = arith.constant 0 : index
    %c2 = arith.constant 2 : index
    %c0_7 = arith.constant 0 : index
    %c0_8 = arith.constant 0 : index
    %4 = vector.load %arg1[%c0_6, %c2, %c0_7, %c0_8] : memref<4x4x16x16xf32, #tpu.memory_space<vmem>>, vector<1x1x16x16xf32>
    %5 = vector.shape_cast %4 : vector<1x1x16x16xf32> to vector<16x16xf32>
    %c0_9 = arith.constant 0 : index
    %c3 = arith.constant 3 : index
    %c0_10 = arith.constant 0 : index
    %c0_11 = arith.constant 0 : index
    %6 = vector.load %arg1[%c0_9, %c3, %c0_10, %c0_11] : memref<4x4x16x16xf32, #tpu.memory_space<vmem>>, vector<1x1x16x16xf32>
    %7 = vector.shape_cast %6 : vector<1x1x16x16xf32> to vector<16x16xf32>
    %8 = tpu.concatenate %1, %3, %5, %7 in 1 : vector<16x16xf32>, vector<16x16xf32>, vector<16x16xf32>, vector<16x16xf32> -> vector<16x64xf32>
    %c0_12 = arith.constant 0 : index
    %c0_13 = arith.constant 0 : index
    %9 = vector.load %arg2[%c0_12, %c0_13] : memref<64x64xf32, #tpu.memory_space<vmem>>, vector<64x64xf32>
    %cst = arith.constant dense<0.000000e+00> : vector<16x64xf32>
    %10 = tpu.matmul %8, %9, %cst {dimension_numbers = #tpu.dot_dimension_numbers<[1], [0], [0], [1], [0, 0, 1, 1], [], []>} : vector<16x64xf32>, vector<64x64xf32>, vector<16x64xf32> -> vector<16x64xf32>
    %c0_14 = arith.constant 0 : index
    %c0_15 = arith.constant 0 : index
    %c0_16 = arith.constant 0 : index
    %11 = vector.load %arg3[%c0_14, %c0_15, %c0_16] : memref<4x16x64xf32, #tpu.memory_space<vmem>>, vector<1x16x64xf32>
    %12 = vector.shape_cast %11 : vector<1x16x64xf32> to vector<16x64xf32>
    %13 = vector.shape_cast %10 : vector<16x64xf32> to vector<1x16x64xf32>
    tpu.vector_store %arg3[%c0_14, %c0_15, %c0_16], %13 {strides = array<i32>} : memref<4x16x64xf32, #tpu.memory_space<vmem>>, vector<1x16x64xf32>,
    %c1_17 = arith.constant 1 : index
    %c0_18 = arith.constant 0 : index
    %c0_19 = arith.constant 0 : index
    %c0_20 = arith.constant 0 : index
    %14 = vector.load %arg1[%c1_17, %c0_18, %c0_19, %c0_20] : memref<4x4x16x16xf32, #tpu.memory_space<vmem>>, vector<1x1x16x16xf32>
    %15 = vector.shape_cast %14 : vector<1x1x16x16xf32> to vector<16x16xf32>
    %c1_21 = arith.constant 1 : index
    %c1_22 = arith.constant 1 : index
    %c0_23 = arith.constant 0 : index
    %c0_24 = arith.constant 0 : index
    %16 = vector.load %arg1[%c1_21, %c1_22, %c0_23, %c0_24] : memref<4x4x16x16xf32, #tpu.memory_space<vmem>>, vector<1x1x16x16xf32>
    %17 = vector.shape_cast %16 : vector<1x1x16x16xf32> to vector<16x16xf32>
    %c1_25 = arith.constant 1 : index
    %c2_26 = arith.constant 2 : index
    %c0_27 = arith.constant 0 : index
    %c0_28 = arith.constant 0 : index
    %18 = vector.load %arg1[%c1_25, %c2_26, %c0_27, %c0_28] : memref<4x4x16x16xf32, #tpu.memory_space<vmem>>, vector<1x1x16x16xf32>
    %19 = vector.shape_cast %18 : vector<1x1x16x16xf32> to vector<16x16xf32>
    %c1_29 = arith.constant 1 : index
    %c3_30 = arith.constant 3 : index
    %c0_31 = arith.constant 0 : index
    %c0_32 = arith.constant 0 : index
    %20 = vector.load %arg1[%c1_29, %c3_30, %c0_31, %c0_32] : memref<4x4x16x16xf32, #tpu.memory_space<vmem>>, vector<1x1x16x16xf32>
    %21 = vector.shape_cast %20 : vector<1x1x16x16xf32> to vector<16x16xf32>
    %22 = tpu.concatenate %15, %17, %19, %21 in 1 : vector<16x16xf32>, vector<16x16xf32>, vector<16x16xf32>, vector<16x16xf32> -> vector<16x64xf32>
    %c0_33 = arith.constant 0 : index
    %c0_34 = arith.constant 0 : index
    %23 = vector.load %arg2[%c0_33, %c0_34] : memref<64x64xf32, #tpu.memory_space<vmem>>, vector<64x64xf32>
    %cst_35 = arith.constant dense<0.000000e+00> : vector<16x64xf32>
    %24 = tpu.matmul %22, %23, %cst_35 {dimension_numbers = #tpu.dot_dimension_numbers<[1], [0], [0], [1], [0, 0, 1, 1], [], []>} : vector<16x64xf32>, vector<64x64xf32>, vector<16x64xf32> -> vector<16x64xf32>
    %c1_36 = arith.constant 1 : index
    %c0_37 = arith.constant 0 : index
    %c0_38 = arith.constant 0 : index
    %25 = vector.load %arg3[%c1_36, %c0_37, %c0_38] : memref<4x16x64xf32, #tpu.memory_space<vmem>>, vector<1x16x64xf32>
    %26 = vector.shape_cast %25 : vector<1x16x64xf32> to vector<16x64xf32>
    %27 = vector.shape_cast %24 : vector<16x64xf32> to vector<1x16x64xf32>
    tpu.vector_store %arg3[%c1_36, %c0_37, %c0_38], %27 {strides = array<i32>} : memref<4x16x64xf32, #tpu.memory_space<vmem>>, vector<1x16x64xf32>,
    %c2_39 = arith.constant 2 : index
    %c0_40 = arith.constant 0 : index
    %c0_41 = arith.constant 0 : index
    %c0_42 = arith.constant 0 : index
    %28 = vector.load %arg1[%c2_39, %c0_40, %c0_41, %c0_42] : memref<4x4x16x16xf32, #tpu.memory_space<vmem>>, vector<1x1x16x16xf32>
    %29 = vector.shape_cast %28 : vector<1x1x16x16xf32> to vector<16x16xf32>
    %c2_43 = arith.constant 2 : index
    %c1_44 = arith.constant 1 : index
    %c0_45 = arith.constant 0 : index
    %c0_46 = arith.constant 0 : index
    %30 = vector.load %arg1[%c2_43, %c1_44, %c0_45, %c0_46] : memref<4x4x16x16xf32, #tpu.memory_space<vmem>>, vector<1x1x16x16xf32>
    %31 = vector.shape_cast %30 : vector<1x1x16x16xf32> to vector<16x16xf32>
    %c2_47 = arith.constant 2 : index
    %c2_48 = arith.constant 2 : index
    %c0_49 = arith.constant 0 : index
    %c0_50 = arith.constant 0 : index
    %32 = vector.load %arg1[%c2_47, %c2_48, %c0_49, %c0_50] : memref<4x4x16x16xf32, #tpu.memory_space<vmem>>, vector<1x1x16x16xf32>
    %33 = vector.shape_cast %32 : vector<1x1x16x16xf32> to vector<16x16xf32>
    %c2_51 = arith.constant 2 : index
    %c3_52 = arith.constant 3 : index
    %c0_53 = arith.constant 0 : index
    %c0_54 = arith.constant 0 : index
    %34 = vector.load %arg1[%c2_51, %c3_52, %c0_53, %c0_54] : memref<4x4x16x16xf32, #tpu.memory_space<vmem>>, vector<1x1x16x16xf32>
    %35 = vector.shape_cast %34 : vector<1x1x16x16xf32> to vector<16x16xf32>
    %36 = tpu.concatenate %29, %31, %33, %35 in 1 : vector<16x16xf32>, vector<16x16xf32>, vector<16x16xf32>, vector<16x16xf32> -> vector<16x64xf32>
    %c0_55 = arith.constant 0 : index
    %c0_56 = arith.constant 0 : index
    %37 = vector.load %arg2[%c0_55, %c0_56] : memref<64x64xf32, #tpu.memory_space<vmem>>, vector<64x64xf32>
    %cst_57 = arith.constant dense<0.000000e+00> : vector<16x64xf32>
    %38 = tpu.matmul %36, %37, %cst_57 {dimension_numbers = #tpu.dot_dimension_numbers<[1], [0], [0], [1], [0, 0, 1, 1], [], []>} : vector<16x64xf32>, vector<64x64xf32>, vector<16x64xf32> -> vector<16x64xf32>
    %c2_58 = arith.constant 2 : index
    %c0_59 = arith.constant 0 : index
    %c0_60 = arith.constant 0 : index
    %39 = vector.load %arg3[%c2_58, %c0_59, %c0_60] : memref<4x16x64xf32, #tpu.memory_space<vmem>>, vector<1x16x64xf32>
    %40 = vector.shape_cast %39 : vector<1x16x64xf32> to vector<16x64xf32>
    %41 = vector.shape_cast %38 : vector<16x64xf32> to vector<1x16x64xf32>
    tpu.vector_store %arg3[%c2_58, %c0_59, %c0_60], %41 {strides = array<i32>} : memref<4x16x64xf32, #tpu.memory_space<vmem>>, vector<1x16x64xf32>,
    %c3_61 = arith.constant 3 : index
    %c0_62 = arith.constant 0 : index
    %c0_63 = arith.constant 0 : index
    %c0_64 = arith.constant 0 : index
    %42 = vector.load %arg1[%c3_61, %c0_62, %c0_63, %c0_64] : memref<4x4x16x16xf32, #tpu.memory_space<vmem>>, vector<1x1x16x16xf32>
    %43 = vector.shape_cast %42 : vector<1x1x16x16xf32> to vector<16x16xf32>
    %c3_65 = arith.constant 3 : index
    %c1_66 = arith.constant 1 : index
    %c0_67 = arith.constant 0 : index
    %c0_68 = arith.constant 0 : index
    %44 = vector.load %arg1[%c3_65, %c1_66, %c0_67, %c0_68] : memref<4x4x16x16xf32, #tpu.memory_space<vmem>>, vector<1x1x16x16xf32>
    %45 = vector.shape_cast %44 : vector<1x1x16x16xf32> to vector<16x16xf32>
    %c3_69 = arith.constant 3 : index
    %c2_70 = arith.constant 2 : index
    %c0_71 = arith.constant 0 : index
    %c0_72 = arith.constant 0 : index
    %46 = vector.load %arg1[%c3_69, %c2_70, %c0_71, %c0_72] : memref<4x4x16x16xf32, #tpu.memory_space<vmem>>, vector<1x1x16x16xf32>
    %47 = vector.shape_cast %46 : vector<1x1x16x16xf32> to vector<16x16xf32>
    %c3_73 = arith.constant 3 : index
    %c3_74 = arith.constant 3 : index
    %c0_75 = arith.constant 0 : index
    %c0_76 = arith.constant 0 : index
    %48 = vector.load %arg1[%c3_73, %c3_74, %c0_75, %c0_76] : memref<4x4x16x16xf32, #tpu.memory_space<vmem>>, vector<1x1x16x16xf32>
    %49 = vector.shape_cast %48 : vector<1x1x16x16xf32> to vector<16x16xf32>
    %50 = tpu.concatenate %43, %45, %47, %49 in 1 : vector<16x16xf32>, vector<16x16xf32>, vector<16x16xf32>, vector<16x16xf32> -> vector<16x64xf32>
    %c0_77 = arith.constant 0 : index
    %c0_78 = arith.constant 0 : index
    %51 = vector.load %arg2[%c0_77, %c0_78] : memref<64x64xf32, #tpu.memory_space<vmem>>, vector<64x64xf32>
    %cst_79 = arith.constant dense<0.000000e+00> : vector<16x64xf32>
    %52 = tpu.matmul %50, %51, %cst_79 {dimension_numbers = #tpu.dot_dimension_numbers<[1], [0], [0], [1], [0, 0, 1, 1], [], []>} : vector<16x64xf32>, vector<64x64xf32>, vector<16x64xf32> -> vector<16x64xf32>
    %c3_80 = arith.constant 3 : index
    %c0_81 = arith.constant 0 : index
    %c0_82 = arith.constant 0 : index
    %53 = vector.load %arg3[%c3_80, %c0_81, %c0_82] : memref<4x16x64xf32, #tpu.memory_space<vmem>>, vector<1x16x64xf32>
    %54 = vector.shape_cast %53 : vector<1x16x64xf32> to vector<16x64xf32>
    %55 = vector.shape_cast %52 : vector<16x64xf32> to vector<1x16x64xf32>
    tpu.vector_store %arg3[%c3_80, %c0_81, %c0_82], %55 {strides = array<i32>} : memref<4x16x64xf32, #tpu.memory_space<vmem>>, vector<1x16x64xf32>,
    return
  }
  func.func @transform_0(%arg0: i32) -> (i32, i32, i32, i32) {
    %c0_i32 = arith.constant 0 : i32
    %c0_i32_0 = arith.constant 0 : i32
    %c0_i32_1 = arith.constant 0 : i32
    %c0_i32_2 = arith.constant 0 : i32
    return %arg0, %c0_i32, %c0_i32_0, %c0_i32_1 : i32, i32, i32, i32
  }
  func.func @transform_1(%arg0: i32) -> (i32, i32) {
    %c0_i32 = arith.constant 0 : i32
    %c0_i32_0 = arith.constant 0 : i32
    %c0_i32_1 = arith.constant 0 : i32
    return %c0_i32, %c0_i32_0 : i32, i32
  }
  func.func @transform_2(%arg0: i32) -> (i32, i32, i32) {
    %c0_i32 = arith.constant 0 : i32
    %c0_i32_0 = arith.constant 0 : i32
    %c0_i32_1 = arith.constant 0 : i32
    return %arg0, %c0_i32, %c0_i32_0 : i32, i32, i32
  }
}

</mosaic_0001>

<bundles_post_ra>
// kernel: tpu_custom_call.1
= control target key start
LH: loop header
LB: loop body
LE: loop exit
PB: predicated region body
PF: predicated region fallthrough
CT: control target
= control target key end

     0   :  { %7 = vsyncpa [#allocation3], 0  ;;  %s1036_s0 = inlined_call_operand.hbm [shape: f32[4,4,16,16], index: 0, kind: input, shape index: {}]   ;;  %s1037_s1 = inlined_call_operand.hbm [shape: f32[64,64], index: 1, kind: input, shape index: {}]   ;;  %s1038_s2 = inlined_call_operand.hbm [shape: f32[4,16,64], index: 2, kind: output, shape index: {}]  }
   0x1   :  { %8 = vsyncpa [#allocation6], 0 }
   0x2   :  { %9 = vsyncpa [#allocation4], 0  ;;  %s864_s9 = smov [#allocation2]   ;;  %s792_s13 = scalar_lea.hbm %s1036_s0, 4096 }
   0x3   :  { %s15_s10 = sshll.u32 %s864_s9, 4  ;;  %p793_p0 = scmp.ne.s32.totalorder %s1036_s0, %s792_s13  ;;  %s16_s10 = int_to_ptr.vmem [resolvable:$true] %s15_s10 }
   0x4   :  { %p796_p1 = scmp.lt.u32.totalorder %s792_s13, %s1036_s0 }
   0x6   :  { %p798_p2 = pnand %p796_p1, %p793_p0 }
   0x8   :  { %801 = shalt.err (!%p798_p2)
}
   0x9   :  { %s802_s18 = scalar_lea.vmem %s16_s10, 4096  ;;  %p807_p4 = scmp.lt.s32.totalorder %s16_s10, %s16_s10 }
   0xa   :  { %p803_p3 = scmp.ne.s32.totalorder %s16_s10, %s802_s18  ;;  %p808_p5 = scmp.lt.s32.totalorder %s802_s18, %s802_s18 }
   0xc   :  { %p809_p6 = por %p808_p5, %p807_p4 }
   0xe   :  { %p810_p7 = pnand %p809_p6, %p803_p3 }
  0x10   :  { %813 = shalt.err (!%p810_p7)
}
  0x11   :  { %s865_s19 = smov 128   ;;  %s866_s20 = smov 8  }
  0x12   :  { %21 = dma.hbm_to_vmem [thread:$0]  %s1036_s0, 4096, %s16_s10, [#allocation3], %s865_s19, %s865_s19, %s866_s20  }
  0x13   :  { %s867_s23 = smov [#allocation5]   ;;  %s814_s27 = scalar_lea.hbm %s1037_s1, 1024 }
  0x14   :  { %s27_s24 = sshll.u32 %s867_s23, 4  ;;  %p815_p8 = scmp.ne.s32.totalorder %s1037_s1, %s814_s27  ;;  %s28_s24 = int_to_ptr.vmem [resolvable:$true] %s27_s24 }
  0x15   :  { %p818_p9 = scmp.lt.u32.totalorder %s814_s27, %s1037_s1 }
  0x17   :  { %p820_p10 = pnand %p818_p9, %p815_p8 }
  0x19   :  { %823 = shalt.err (!%p820_p10)
}
  0x1a   :  { %s824_s4 = scalar_lea.vmem %s28_s24, 1024  ;;  %p829_p12 = scmp.lt.s32.totalorder %s28_s24, %s28_s24 }
  0x1b   :  { %p825_p11 = scmp.ne.s32.totalorder %s28_s24, %s824_s4  ;;  %p830_p13 = scmp.lt.s32.totalorder %s824_s4, %s824_s4 }
  0x1d   :  { %p831_p0 = por %p830_p13, %p829_p12 }
  0x1f   :  { %p832_p1 = pnand %p831_p0, %p825_p11 }
  0x21   :  { %835 = shalt.err (!%p832_p1)
}
  0x22   :  { %33 = dma.hbm_to_vmem [thread:$0]  %s1037_s1, 1024, %s28_s24, [#allocation6], %s865_s19, %s865_s19, %s866_s20  }
  0x23   :  { %858 = dma.done.wait [#allocation3], 4096  }
  0x24   :  { %859 = vsyncadd [#allocation3], 4294963200 }
  0x25   :  { %860 = dma.done.wait [#allocation6], 1024  }
  0x26   :  { %861 = vsyncadd [#allocation6], 4294966272  ;;  %v44_v0 = vld [vmem:[#allocation2 + $0x18] sm:$0xff]  ;;  %v43_v1 = vld [vmem:[#allocation2 + $0x10] sm:$0xff]  ;;  %s868_s6 = smov 16   ;;  %s869_s7 = smov 32  }
  0x27   :  { %55 = vrot.lane.b32.xlu1 %v44_v0, %s868_s6  ;;  %53 = vrot.lane.b32.xlu0 %v43_v1, %s868_s6  ;;  %v46_v2 = vld [vmem:[#allocation2 + $0x20] sm:$0xff]  ;;  %v180_v3 = vld [vmem:[#allocation2 + $0x50] sm:$0xff]  ;;  %v181_v5 = vld [vmem:[#allocation2 + $0x58] sm:$0xff]  ;;  %s870_s1 = smov 48   ;;  %vm75_vm0 = vcmask 130048   ;;  %vm78_vm1 = vcmask 261120  }
  0x28   :  { %v183_v4 = vld [vmem:[#allocation2 + $0x60] sm:$0xff]  ;;  %v49_v6 = vld [vmem:[#allocation2 + $0x30] sm:$0xff]  ;;  %v85_v8 = vld [vmem:[#allocation5 + $0x8] sm:$0xff]  ;;  %vm81_vm2 = vcmask 392192   ;;  %vm92_vm3 = vcmask 523264   ;;  %s871_s8 = smov [#allocation7]  }
  0x29   :  { %v84_v7 = vld [vmem:[#allocation5] sm:$0xff]  ;;  %v47_v9 = vld [vmem:[#allocation2 + $0x28] sm:$0xff]  ;;  %v86_v11 = vld [vmem:[#allocation5 + $0x10] sm:$0xff]  ;;  %s583_s9 = sshll.u32 %s871_s8, 4  ;;  %s584_s9 = int_to_ptr.vmem [resolvable:$true] %s583_s9 }
  0x2a   :  { %v923_v10 = vpack.c.bf16 %v85_v8, %v84_v7  ;;  %v87_v12 = vld [vmem:[#allocation5 + $0x18] sm:$0xff]  ;;  %v88_v14 = vld [vmem:[#allocation5 + $0x20] sm:$0xff]  ;;  %v89_v15 = vld [vmem:[#allocation5 + $0x28] sm:$0xff]  ;;  %s836_s10 = scalar_lea.vmem %s584_s9, 1024  ;;  %p841_p3 = scmp.lt.s32.totalorder %s584_s9, %s584_s9 }
  0x2b   :  { %61 = vrot.lane.b32.xlu1 %v46_v2, %s869_s7  ;;  %190 = vrot.lane.b32.xlu0 %v180_v3, %s868_s6  ;;  %v925_v13 = vpack.c.bf16 %v87_v12, %v86_v11  ;;  %v186_v16 = vld [vmem:[#allocation2 + $0x70] sm:$0xff]  ;;  %v184_v17 = vld [vmem:[#allocation2 + $0x68] sm:$0xff]  ;;  %v935_v18 = vpack.c.bf16 %v89_v15, %v88_v14  ;;  %v91_v20 = vld [vmem:[#allocation5 + $0x38] sm:$0xff]  ;;  %p837_p2 = scmp.ne.s32.totalorder %s584_s9, %s836_s10  ;;  %p842_p4 = scmp.lt.s32.totalorder %s836_s10, %s836_s10 }
  0x2c   :  { %721 = vmatprep.subr.bf16.mxu0 %v923_v10  ;;  %737 = vmatprep.subr.bf16.mxu1 %v923_v10  ;;  %v90_v19 = vld [vmem:[#allocation5 + $0x30] sm:$0xff]  ;;  %v187_v21 = vld [vmem:[#allocation2 + $0x78] sm:$0xff]  ;;  %v317_v26 = vld [vmem:[#allocation2 + $0xa0] sm:$0xff] }
  0x2d   :  { %723 = vmatpush3.bf16.msra.mxu0 %v923_v10  ;;  %739 = vmatpush3.bf16.msra.mxu1 %v923_v10  ;;  %v50_v22 = vld [vmem:[#allocation2 + $0x38] sm:$0xff]  ;;  %v943_v23 = vpack.c.bf16 %v91_v20, %v90_v19  ;;  %v448_v24 = vld [vmem:[#allocation2 + $0xd0] sm:$0xff]  ;;  %v451_v28 = vld [vmem:[#allocation2 + $0xe0] sm:$0xff]  ;;  %p843_p5 = por %p842_p4, %p841_p3 }
  0x2e   :  { %725 = vmatprep.subr.bf16.mxu0 %v925_v13  ;;  %741 = vmatprep.subr.bf16.mxu1 %v925_v13  ;;  %v314_v25 = vld [vmem:[#allocation2 + $0x90] sm:$0xff]  ;;  %v315_v27 = vld [vmem:[#allocation2 + $0x98] sm:$0xff]  ;;  %v318_v31 = vld [vmem:[#allocation2 + $0xa8] sm:$0xff] }
  0x2f   :  { %198 = vrot.lane.b32.xlu1 %v183_v4, %s869_s7  ;;  %192 = vrot.lane.b32.xlu0 %v181_v5, %s868_s6  ;;  %v449_v29 = vld [vmem:[#allocation2 + $0xd8] sm:$0xff]  ;;  %v320_v30 = vld [vmem:[#allocation2 + $0xb0] sm:$0xff]  ;;  %v452_v33 = vld [vmem:[#allocation2 + $0xe8] sm:$0xff]  ;;  %p844_p6 = pnand %p843_p5, %p837_p2 }
  0x30   :  { %v454_v32 = vld [vmem:[#allocation2 + $0xf0] sm:$0xff]  ;;  %v455_v34 = vld [vmem:[#allocation2 + $0xf8] sm:$0xff]  ;;  %v40_v40 = vld [vmem:[#allocation2] sm:$0xff] }
  0x31   :  { %727 = vmatpush3.bf16.msra.mxu0 %v925_v13  ;;  %743 = vmatpush3.bf16.msra.mxu1 %v925_v13  ;;  %v321_v35 = vld [vmem:[#allocation2 + $0xb8] sm:$0xff]  ;;  %v177_v45 = vld [vmem:[#allocation2 + $0x40] sm:$0xff]  ;;  %v41_v50 = vld [vmem:[#allocation2 + $0x8] sm:$0xff] }
  0x32   :  { %729 = vmatprep.subr.bf16.mxu0 %v935_v18  ;;  %745 = vmatprep.subr.bf16.mxu1 %v935_v18  ;;  %v178_v52 = vld [vmem:[#allocation2 + $0x48] sm:$0xff]  ;;  %v311_v4 = vld [vmem:[#allocation2 + $0x80] sm:$0xff] }
  0x33   :  { %69 = vrot.lane.b32.xlu1 %v49_v6, %s870_s1  ;;  %63 = vrot.lane.b32.xlu0 %v47_v9, %s869_s7  ;;  %v445_v8 = vld [vmem:[#allocation2 + $0xc0] sm:$0xff]  ;;  %v312_v14 = vld [vmem:[#allocation2 + $0x88] sm:$0xff] }
  0x35   :  { %731 = vmatpush3.bf16.msra.mxu0 %v935_v18  ;;  %747 = vmatpush3.bf16.msra.mxu1 %v935_v18 }
  0x36   :  { %733 = vmatprep.subr.bf16.mxu0 %v943_v23  ;;  %749 = vmatprep.subr.bf16.mxu1 %v943_v23 }
  0x37   :  { %206 = vrot.lane.b32.xlu1 %v186_v16, %s870_s1  ;;  %200 = vrot.lane.b32.xlu0 %v184_v17, %s869_s7  ;;  %v446_v16 = vld [vmem:[#allocation2 + $0xc8] sm:$0xff] }
  0x39   :  { %735 = vmatpush3.bf16.msra.mxu0 %v943_v23  ;;  %751 = vmatpush3.bf16.msra.mxu1 %v943_v23 }
  0x3a   :  { %753 = vmatprep.subr.bf16.mxu0 %v923_v10  ;;  %769 = vmatprep.subr.bf16.mxu1 %v923_v10 }
  0x3b   :  { %208 = vrot.lane.b32.xlu1 %v187_v21, %s870_s1  ;;  %71 = vrot.lane.b32.xlu0 %v50_v22, %s870_s1 }
  0x3f   :  { %458 = vrot.lane.b32.xlu1 %v448_v24, %s868_s6  ;;  %324 = vrot.lane.b32.xlu0 %v314_v25, %s868_s6 }
  0x43   :  { %332 = vrot.lane.b32.xlu1 %v317_v26, %s869_s7  ;;  %326 = vrot.lane.b32.xlu0 %v315_v27, %s868_s6 }
  0x47   :  { %466 = vrot.lane.b32.xlu1 %v451_v28, %s869_s7  ;;  %460 = vrot.lane.b32.xlu0 %v449_v29, %s868_s6 }
  0x4b   :  { %340 = vrot.lane.b32.xlu1 %v320_v30, %s870_s1  ;;  %334 = vrot.lane.b32.xlu0 %v318_v31, %s869_s7 }
  0x4f   :  { %474 = vrot.lane.b32.xlu1 %v454_v32, %s870_s1  ;;  %468 = vrot.lane.b32.xlu0 %v452_v33, %s869_s7 }
  0x53   :  { %476 = vrot.lane.b32.xlu1 %v455_v34, %s870_s1  ;;  %342 = vrot.lane.b32.xlu0 %v321_v35, %s870_s1 }
  0x99   :  { %v56_v36 = vpop.permute.xlu1 %55  ;;  %v54_v37 = vpop.permute.xlu0 %53 }
  0x9a   :  { %v76_v43 = vsel %vm75_vm0, %v40_v40, %v54_v37  ;;  %v77_v56 = vsel %vm75_vm0, %v41_v50, %v56_v36 }
  0x9d   :  { %v62_v38 = vpop.permute.xlu1 %61  ;;  %v191_v39 = vpop.permute.xlu0 %190 }
  0x9e   :  { %v79_v44 = vsel %vm78_vm1, %v76_v43, %v62_v38  ;;  %v212_v49 = vsel %vm75_vm0, %v177_v45, %v191_v39 }
  0xa1   :  { %v199_v41 = vpop.permute.xlu1 %198  ;;  %v193_v42 = vpop.permute.xlu0 %192 }
  0xa2   :  { %v214_v51 = vsel %vm78_vm1, %v212_v49, %v199_v41  ;;  %v213_v57 = vsel %vm75_vm0, %v178_v52, %v193_v42 }
  0xa5   :  { %v70_v46 = vpop.permute.xlu1 %69  ;;  %v64_v47 = vpop.permute.xlu0 %63 }
  0xa6   :  { %v82_v48 = vsel %vm81_vm2, %v79_v44, %v70_v46  ;;  %v80_v58 = vsel %vm78_vm1, %v77_v56, %v64_v47 }
  0xa7   :  { %660 = vmatprep.mubr.msk.f32.mxu0 %vm92_vm3, %v82_v48 }
  0xa9   :  { %v207_v53 = vpop.permute.xlu1 %206  ;;  %v201_v54 = vpop.permute.xlu0 %200 }
  0xaa   :  { %v216_v55 = vsel %vm81_vm2, %v214_v51, %v207_v53  ;;  %v215_v59 = vsel %vm78_vm1, %v213_v57, %v201_v54 }
  0xab   :  { %679 = vmatprep.mubr.msk.f32.mxu1 %vm92_vm3, %v216_v55 }
  0xad   :  { %v209_v60 = vpop.permute.xlu1 %208  ;;  %v72_v61 = vpop.permute.xlu0 %71 }
  0xae   :  { %v217_v62 = vsel %vm81_vm2, %v215_v59, %v209_v60  ;;  %v83_v63 = vsel %vm81_vm2, %v80_v58, %v72_v61 }
  0xaf   :  { %661 = vmatmul.mubr.msk.f32.vlgmr.msra.gmra.mrb[0].mxu0 %vm92_vm3, %v83_v63  ;;  %680 = vmatmul.mubr.msk.f32.vlgmr.msra.gmra.mrb[0].mxu1 %vm92_vm3, %v217_v62 }
  0xb0   :  { %755 = vmatpush3.bf16.msra.mxu0 %v923_v10  ;;  %771 = vmatpush3.bf16.msra.mxu1 %v923_v10 }
  0xb1   :  { %v459_v0 = vpop.permute.xlu1 %458  ;;  %v325_v1 = vpop.permute.xlu0 %324  ;;  %757 = vmatprep.subr.bf16.mxu0 %v925_v13  ;;  %773 = vmatprep.subr.bf16.mxu1 %v925_v13 }
  0xb2   :  { %v346_v7 = vsel %vm75_vm0, %v311_v4, %v325_v1 }
  0xb4   :  { %759 = vmatpush3.bf16.msra.mxu0 %v925_v13  ;;  %775 = vmatpush3.bf16.msra.mxu1 %v925_v13  ;;  %v480_v13 = vsel %vm75_vm0, %v445_v8, %v459_v0 }
  0xb5   :  { %v333_v2 = vpop.permute.xlu1 %332  ;;  %v327_v3 = vpop.permute.xlu0 %326  ;;  %761 = vmatprep.subr.bf16.mxu0 %v935_v18  ;;  %777 = vmatprep.subr.bf16.mxu1 %v935_v18 }
  0xb6   :  { %v348_v9 = vsel %vm78_vm1, %v346_v7, %v333_v2  ;;  %v347_v20 = vsel %vm75_vm0, %v312_v14, %v327_v3 }
  0xb8   :  { %763 = vmatpush3.bf16.msra.mxu0 %v935_v18  ;;  %779 = vmatpush3.bf16.msra.mxu1 %v935_v18 }
  0xb9   :  { %v467_v5 = vpop.permute.xlu1 %466  ;;  %v461_v6 = vpop.permute.xlu0 %460  ;;  %765 = vmatprep.subr.bf16.mxu0 %v943_v23  ;;  %781 = vmatprep.subr.bf16.mxu1 %v943_v23 }
  0xba   :  { %v482_v15 = vsel %vm78_vm1, %v480_v13, %v467_v5  ;;  %v481_v21 = vsel %vm75_vm0, %v446_v16, %v461_v6 }
  0xbc   :  { %767 = vmatpush3.bf16.msra.mxu0 %v943_v23  ;;  %783 = vmatpush3.bf16.msra.mxu1 %v943_v23 }
  0xbd   :  { %v341_v10 = vpop.permute.xlu1 %340  ;;  %v335_v11 = vpop.permute.xlu0 %334 }
  0xbe   :  { %v350_v12 = vsel %vm81_vm2, %v348_v9, %v341_v10  ;;  %v349_v22 = vsel %vm78_vm1, %v347_v20, %v335_v11 }
  0xbf   :  { %698 = vmatprep.mubr.msk.f32.mxu0 %vm92_vm3, %v350_v12 }
  0xc1   :  { %v475_v17 = vpop.permute.xlu1 %474  ;;  %v469_v18 = vpop.permute.xlu0 %468 }
  0xc2   :  { %v484_v19 = vsel %vm81_vm2, %v482_v15, %v475_v17  ;;  %v483_v23 = vsel %vm78_vm1, %v481_v21, %v469_v18 }
  0xc3   :  { %717 = vmatprep.mubr.msk.f32.mxu1 %vm92_vm3, %v484_v19 }
  0xc5   :  { %v477_v24 = vpop.permute.xlu1 %476  ;;  %v343_v25 = vpop.permute.xlu0 %342 }
  0xc6   :  { %v485_v26 = vsel %vm81_vm2, %v483_v23, %v477_v24  ;;  %v351_v27 = vsel %vm81_vm2, %v349_v22, %v343_v25 }
  0xc7   :  { %699 = vmatmul.mubr.msk.f32.vlgmr.msra.gmra.mrb[2].mxu0 %vm92_vm3, %v351_v27  ;;  %718 = vmatmul.mubr.msk.f32.vlgmr.msra.gmra.mrb[2].mxu1 %vm92_vm3, %v485_v26 }
 0x182   :  { %v662_v28 = vpop.f32.mrb[0].mxu0  ;;  %v681_v29 = vpop.f32.mrb[0].mxu1 }
 0x183   :  { %175 = vst.msk [vmem:[#allocation7 + $0x8] sm:$0xff] %vm92_vm3, %v662_v28  ;;  %309 = vst.msk [vmem:[#allocation7 + $0x18] sm:$0xff] %vm92_vm3, %v681_v29  ;;  %v165_v30 = vpop.f32.mrb[1].mxu0  ;;  %v298_v31 = vpop.f32.mrb[1].mxu1 }
 0x184   :  { %174 = vst.msk [vmem:[#allocation7] sm:$0xff] %vm92_vm3, %v165_v30  ;;  %308 = vst.msk [vmem:[#allocation7 + $0x10] sm:$0xff] %vm92_vm3, %v298_v31 }
 0x19a   :  { %v700_v32 = vpop.f32.mrb[2].mxu0  ;;  %v719_v33 = vpop.f32.mrb[2].mxu1 }
 0x19b   :  { %443 = vst.msk [vmem:[#allocation7 + $0x28] sm:$0xff] %vm92_vm3, %v700_v32  ;;  %577 = vst.msk [vmem:[#allocation7 + $0x38] sm:$0xff] %vm92_vm3, %v719_v33  ;;  %v432_v34 = vpop.f32.mrb[3].mxu0  ;;  %v566_v35 = vpop.f32.mrb[3].mxu1 }
 0x19c   :  { %442 = vst.msk [vmem:[#allocation7 + $0x20] sm:$0xff] %vm92_vm3, %v432_v34  ;;  %576 = vst.msk [vmem:[#allocation7 + $0x30] sm:$0xff] %vm92_vm3, %v566_v35 }
 0x19d   :  { %847 = shalt.err (!%p844_p6)
}
 0x19e   :  { %s848_s13 = scalar_lea.hbm %s1038_s2, 1024 }
 0x19f   :  { %p849_p7 = scmp.ne.s32.totalorder %s1038_s2, %s848_s13  ;;  %p852_p8 = scmp.lt.u32.totalorder %s848_s13, %s1038_s2 }
 0x1a1   :  { %p854_p9 = pnand %p852_p8, %p849_p7 }
 0x1a3   :  { %857 = shalt.err (!%p854_p9)
}
 0x1a4   :  { %589 = dma.vmem_to_hbm [thread:$0]  %s584_s9, 1024, %s1038_s2, [#allocation4], %s865_s19, %s865_s19, %s866_s20  }
 0x1a5   :  { %862 = dma.done.wait [#allocation4], 1024  }
 0x1a6   :  { %863 = vsyncadd [#allocation4], 4294966272 }
 0x1a7   :  { %593 = vsyncpa [#allocation3], 1 }
 0x1a8   :  { %594 = vsyncpa [#allocation6], 1 }
 0x1a9   :  { %595 = vsyncpa [#allocation4], 1 }

</bundles_post_ra>
